<compile_context>
chip_gen: v6e
topology: v6e:2x2x1
jax: 0.10.0
libtpu: 0.0.40
codegen_flags: <defaults>
</compile_context>

<pallas_src>
import functools
import math

import jax
import jax.numpy as jnp
from jax.experimental import pallas as pl
from jax.experimental.pallas import tpu as pltpu


def _rope_kernel(x_ref, cos_ref, sina_ref, sinb_ref, o_ref, *, d2):
    x = x_ref[...]
    width = x.shape[-1]
    # partner_lo[c] = x[c + d2]   (used only where sinA != 0: lower rope half)
    partner_lo = pltpu.roll(x, shift=width - d2, axis=1)
    # partner_hi[c] = x[c - d2]   (used only where sinB != 0: upper rope half)
    partner_hi = pltpu.roll(x, shift=d2, axis=1)
    out = x * cos_ref[...] + partner_lo * sina_ref[...] + partner_hi * sinb_ref[...]
    o_ref[...] = out.astype(o_ref.dtype)


def _largest_divisor_tile(total, unit, limit):
    """Largest multiple of `unit` dividing `total` and <= limit (at least `unit`)."""
    best = unit
    cand = unit
    while cand <= total and cand <= limit:
        if total % cand == 0:
            best = cand
        cand += unit
    return best


def rotary_positional_embeddings(x, rope_d, base=10000,
                                 target_block_bytes=1 << 20,
                                 max_cols_per_tile=8192):
    """Apply RoPE to the first `rope_d` features of x: [b, h, t, d_model]."""
    b, h, t, dm = x.shape
    assert rope_d % 2 == 0 and 0 < rope_d <= dm
    d2 = rope_d // 2

    # ---- one-time table precompute (plain JAX glue, mirrors _build_cache) ----
    theta = 1.0 / (base ** (jnp.arange(0, rope_d, 2, dtype=jnp.float32) / rope_d))
    seq_idx = jnp.arange(t, dtype=jnp.float32)
    idx_theta = seq_idx[:, None] * theta[None, :]                  # [t, d/2]
    idx_theta2 = jnp.concatenate([idx_theta, idx_theta], axis=-1)  # [t, d]
    cos_t = jnp.cos(idx_theta2)                                    # keep f32 tables
    sin_t = jnp.sin(idx_theta2)
    lane = jnp.arange(rope_d)
    sin_a = jnp.where(lane < d2, -sin_t, 0.0)    # lower half: -sin * x[c + d2]
    sin_b = jnp.where(lane >= d2, sin_t, 0.0)    # upper half: +sin * x[c - d2]
    pad = dm - rope_d                            # pass-through features
    cos_full = jnp.pad(cos_t, ((0, 0), (0, pad)), constant_values=1.0)
    sin_a_full = jnp.pad(sin_a, ((0, 0), (0, pad)), constant_values=0.0)
    sin_b_full = jnp.pad(sin_b, ((0, 0), (0, pad)), constant_values=0.0)

    # ---- flatten to a lane-dense 2-D slab (pure reshape, no data movement) ----
    R, C = b * h, t * dm
    x2 = x.reshape(R, C)
    cos_flat = cos_full.reshape(1, C)
    sin_a_flat = sin_a_full.reshape(1, C)
    sin_b_flat = sin_b_full.reshape(1, C)

    # ---- tile selection: lane-dense columns, VMEM-safe block bytes ----
    itemsize = jnp.dtype(x.dtype).itemsize
    col_unit = (dm * 128) // math.gcd(dm, 128)          # lcm(d_model, 128)
    if C % col_unit == 0:
        tc = _largest_divisor_tile(C, col_unit, max_cols_per_tile)
    else:
        tc = C              # full-width block is always legal; dm still divides it
    if R % 8 == 0:
        row_limit = max(8, target_block_bytes // max(1, tc * itemsize))
        tr = _largest_divisor_tile(R, 8, row_limit)
    else:
        tr = R

    grid = (R // tr, C // tc)
    kernel = functools.partial(_rope_kernel, d2=d2)

    out2 = pl.pallas_call(
        kernel,
        out_shape=jax.ShapeDtypeStruct((R, C), x.dtype),
        grid_spec=pl.GridSpec(
            grid=grid,
            in_specs=[
                pl.BlockSpec((tr, tc), lambda r, c: (r, c)),   # x
                pl.BlockSpec((1, tc), lambda r, c: (0, c)),    # cos (padded w/ 1)
                pl.BlockSpec((1, tc), lambda r, c: (0, c)),    # sinA (signed, padded w/ 0)
                pl.BlockSpec((1, tc), lambda r, c: (0, c)),    # sinB (padded w/ 0)
            ],
            out_specs=pl.BlockSpec((tr, tc), lambda r, c: (r, c)),
        ),
        compiler_params=pltpu.CompilerParams(
            dimension_semantics=("parallel", "parallel")),
    )(x2, cos_flat, sin_a_flat, sin_b_flat)
    return out2.reshape(b, h, t, dm)


def _rope_reference(x, rope_d, base=10000):
    """Pure-JAX reference matching the PyTorch module semantics."""
    b, h, t, dm = x.shape
    theta = 1.0 / (base ** (jnp.arange(0, rope_d, 2, dtype=jnp.float32) / rope_d))
    seq_idx = jnp.arange(t, dtype=jnp.float32)
    idx_theta = jnp.einsum("n,d->nd", seq_idx, theta)
    idx_theta2 = jnp.concatenate([idx_theta, idx_theta], -1)
    cos = jnp.cos(idx_theta2)[None, None, :, :]
    sin = jnp.sin(idx_theta2)[None, None, :, :]
    x_rope, x_pass = x[..., :rope_d], x[..., rope_d:]
    d2 = rope_d // 2
    neg_half = jnp.concatenate([-x_rope[..., d2:], x_rope[..., :d2]], axis=-1)
    x_rope = x_rope * cos + neg_half * sin
    return jnp.concatenate([x_rope, x_pass], axis=-1)


if __name__ == "__main__":
    key = jax.random.PRNGKey(0)
    b, h, t, dm = 2, 4, 16, 32
    rope_d = 16

    x = jax.random.normal(key, (b, h, t, dm), dtype=jnp.float32)

    out = rotary_positional_embeddings(x, rope_d)
    out = jax.block_until_ready(out)

    ref = _rope_reference(x, rope_d)
    assert out.shape == (b, h, t, dm)
    assert jnp.allclose(out, ref, atol=1e-5, rtol=1e-5)

    print("KERNEL_OK")
</pallas_src>

<mosaic_0001>
module attributes {stable_mosaic.version = 11 : i64} {
  func.func @_rope_kernel(%arg0: i32, %arg1: i32, %arg2: memref<8x512xf32, #tpu.memory_space<vmem>>, %arg3: memref<1x512xf32, #tpu.memory_space<vmem>>, %arg4: memref<1x512xf32, #tpu.memory_space<vmem>>, %arg5: memref<1x512xf32, #tpu.memory_space<vmem>>, %arg6: memref<8x512xf32, #tpu.memory_space<vmem>>) attributes {dimension_semantics = [#tpu.dimension_semantics<parallel>, #tpu.dimension_semantics<parallel>], iteration_bounds = array<i64: 1, 1>, scalar_prefetch = 0 : i64, scratch_operands = 0 : i64, tpu.core_type = #tpu.core_type<tc>, window_params = [{transform_indices = @transform_0, window_bounds = array<i64: 8, 512>}, {transform_indices = @transform_1, window_bounds = array<i64: 1, 512>}, {transform_indices = @transform_2, window_bounds = array<i64: 1, 512>}, {transform_indices = @transform_3, window_bounds = array<i64: 1, 512>}, {transform_indices = @transform_4, window_bounds = array<i64: 8, 512>}]} {
    %c0 = arith.constant 0 : index
    %c0_0 = arith.constant 0 : index
    %0 = vector.load %arg2[%c0, %c0_0] : memref<8x512xf32, #tpu.memory_space<vmem>>, vector<8x512xf32>
    %c504_i32 = arith.constant 504 : i32
    %1 = tpu.dynamic_rotate %0 by %c504_i32 dim 1 : vector<8x512xf32>, i32 -> vector<8x512xf32>
    %c8_i32 = arith.constant 8 : i32
    %2 = tpu.dynamic_rotate %0 by %c8_i32 dim 1 : vector<8x512xf32>, i32 -> vector<8x512xf32>
    %c0_1 = arith.constant 0 : index
    %c0_2 = arith.constant 0 : index
    %3 = vector.load %arg3[%c0_1, %c0_2] : memref<1x512xf32, #tpu.memory_space<vmem>>, vector<1x512xf32>
    %4 = vector.broadcast %3 : vector<1x512xf32> to vector<8x512xf32>
    %5 = arith.mulf %0, %4 : vector<8x512xf32>
    %c0_3 = arith.constant 0 : index
    %c0_4 = arith.constant 0 : index
    %6 = vector.load %arg4[%c0_3, %c0_4] : memref<1x512xf32, #tpu.memory_space<vmem>>, vector<1x512xf32>
    %7 = vector.broadcast %6 : vector<1x512xf32> to vector<8x512xf32>
    %8 = arith.mulf %1, %7 : vector<8x512xf32>
    %9 = arith.addf %5, %8 : vector<8x512xf32>
    %c0_5 = arith.constant 0 : index
    %c0_6 = arith.constant 0 : index
    %10 = vector.load %arg5[%c0_5, %c0_6] : memref<1x512xf32, #tpu.memory_space<vmem>>, vector<1x512xf32>
    %11 = vector.broadcast %10 : vector<1x512xf32> to vector<8x512xf32>
    %12 = arith.mulf %2, %11 : vector<8x512xf32>
    %13 = arith.addf %9, %12 : vector<8x512xf32>
    %c0_7 = arith.constant 0 : index
    %c0_8 = arith.constant 0 : index
    %14 = vector.load %arg6[%c0_7, %c0_8] : memref<8x512xf32, #tpu.memory_space<vmem>>, vector<8x512xf32>
    tpu.vector_store %arg6[%c0_7, %c0_8], %13 {strides = array<i32>} : memref<8x512xf32, #tpu.memory_space<vmem>>, vector<8x512xf32>,
    return
  }
  func.func @transform_0(%arg0: i32, %arg1: i32) -> (i32, i32) {
    %c0_i32 = arith.constant 0 : i32
    return %arg0, %arg1 : i32, i32
  }
  func.func @transform_1(%arg0: i32, %arg1: i32) -> (i32, i32) {
    %c0_i32 = arith.constant 0 : i32
    %c0_i32_0 = arith.constant 0 : i32
    return %c0_i32, %arg1 : i32, i32
  }
  func.func @transform_2(%arg0: i32, %arg1: i32) -> (i32, i32) {
    %c0_i32 = arith.constant 0 : i32
    %c0_i32_0 = arith.constant 0 : i32
    return %c0_i32, %arg1 : i32, i32
  }
  func.func @transform_3(%arg0: i32, %arg1: i32) -> (i32, i32) {
    %c0_i32 = arith.constant 0 : i32
    %c0_i32_0 = arith.constant 0 : i32
    return %c0_i32, %arg1 : i32, i32
  }
  func.func @transform_4(%arg0: i32, %arg1: i32) -> (i32, i32) {
    %c0_i32 = arith.constant 0 : i32
    return %arg0, %arg1 : i32, i32
  }
}

</mosaic_0001>

<bundles_post_ra>
// kernel: tpu_custom_call.1
= control target key start
LH: loop header
LB: loop body
LE: loop exit
PB: predicated region body
PF: predicated region fallthrough
CT: control target
= control target key end

     0   :  { %9 = vsyncpa [#allocation3], 0  ;;  %s337_s0 = inlined_call_operand.hbm [shape: f32[8,512], index: 0, kind: input, shape index: {}]   ;;  %s338_s1 = inlined_call_operand.hbm [shape: f32[1,512], index: 1, kind: input, shape index: {}]   ;;  %s339_s2 = inlined_call_operand.hbm [shape: f32[1,512], index: 2, kind: input, shape index: {}]   ;;  %s340_s3 = inlined_call_operand.vmem [shape: f32[1,512], index: 3, kind: input, shape index: {}]   ;;  %s341_s4 = inlined_call_operand.hbm [shape: f32[8,512], index: 4, kind: output, shape index: {}]  }
   0x1   :  { %10 = vsyncpa [#allocation6], 0 }
   0x2   :  { %11 = vsyncpa [#allocation4], 0  ;;  %s283_s15 = smov [#allocation5]   ;;  %s284_s17 = smov [#allocation2]  }
   0x3   :  { %s28_s16 = sshll.u32 %s283_s15, 4  ;;  %s18_s18 = sshll.u32 %s284_s17, 4  ;;  %s29_s16 = int_to_ptr.vmem [resolvable:$true] %s28_s16  ;;  %s19_s18 = int_to_ptr.vmem [resolvable:$true] %s18_s18 }
   0x4   :  { %s205_s19 = scalar_lea.vmem %s29_s16, 64  ;;  %p210_p1 = scmp.lt.s32.totalorder %s29_s16, %s29_s16 }
   0x5   :  { %p206_p0 = scmp.ne.s32.totalorder %s29_s16, %s205_s19  ;;  %p211_p2 = scmp.lt.s32.totalorder %s205_s19, %s205_s19 }
   0x7   :  { %p212_p3 = por %p211_p2, %p210_p1 }
   0x9   :  { %p213_p4 = pnand %p212_p3, %p206_p0 }
   0xb   :  { %216 = shalt.err (!%p213_p4)
}
   0xc   :  { %31 = dma.hbm_to_vmem [thread:$0]  %s338_s1, 64, %s29_s16, [#allocation6]  }
   0xd   :  { %s225_s22 = scalar_lea.vmem %s19_s18, 512  ;;  %p230_p6 = scmp.lt.s32.totalorder %s19_s18, %s19_s18 }
   0xe   :  { %p226_p5 = scmp.ne.s32.totalorder %s19_s18, %s225_s22  ;;  %p231_p7 = scmp.lt.s32.totalorder %s225_s22, %s225_s22 }
  0x10   :  { %p232_p8 = por %p231_p7, %p230_p6 }
  0x12   :  { %p233_p9 = pnand %p232_p8, %p226_p5 }
  0x14   :  { %236 = shalt.err (!%p233_p9)
}
  0x15   :  { %21 = dma.hbm_to_vmem [thread:$0]  %s337_s0, 512, %s19_s18, [#allocation3]  }
  0x16   :  { %s285_s25 = smov [#allocation7]  }
  0x17   :  { %s38_s26 = sshll.u32 %s285_s25, 4  ;;  %s39_s26 = int_to_ptr.vmem [resolvable:$true] %s38_s26 }
  0x18   :  { %s245_s27 = scalar_lea.vmem %s39_s26, 64  ;;  %p250_p11 = scmp.lt.s32.totalorder %s39_s26, %s39_s26 }
  0x19   :  { %p246_p10 = scmp.ne.s32.totalorder %s39_s26, %s245_s27  ;;  %p251_p12 = scmp.lt.s32.totalorder %s245_s27, %s245_s27 }
  0x1b   :  { %p252_p13 = por %p251_p12, %p250_p11 }
  0x1d   :  { %p253_p0 = pnand %p252_p13, %p246_p10 }
  0x1f   :  { %256 = shalt.err (!%p253_p0)
}
  0x20   :  { %41 = dma.hbm_to_vmem [thread:$0]  %s339_s2, 64, %s39_s26, [#allocation6]  }
  0x21   :  { %277 = dma.done.wait [#allocation3], 512  }
  0x22   :  { %278 = vsyncadd [#allocation3], 4294966784 }
  0x23   :  { %279 = dma.done.wait [#allocation6], 128  }
  0x24   :  { %280 = vsyncadd [#allocation6], 4294967168  ;;  %v55_v0 = vld [vmem:[#allocation2 + $0x10] sm:$0xff]  ;;  %v53_v1 = vld [vmem:[#allocation2] sm:$0xff]  ;;  %s286_s0 = smov 120   ;;  %s287_s29 = smov 8   ;;  %v65_v4 = vlaneseq }
  0x25   :  { %61 = vrot.lane.b32.xlu1 %v55_v0, %s286_s0  ;;  %57 = vrot.lane.b32.xlu0 %v53_v1, %s286_s0  ;;  %v56_v2 = vld [vmem:[#allocation2 + $0x18] sm:$0xff]  ;;  %v54_v3 = vld [vmem:[#allocation2 + $0x8] sm:$0xff]  ;;  %v85_v8 = vld [vmem:[#allocation5] sm:$0xf] }
  0x26   :  { %v88_v5 = vshrl.u32 %v65_v4, 7  ;;  %v66_v7 = vand.u32 127, %v65_v4  ;;  %v111_v9 = vld [vmem:[#allocation7] sm:$0xf]  ;;  %v141_v17 = vld [vmem:[%s340_s3] sm:$0xf] }
  0x27   :  { %s288_s3 = smov [#allocation8]  }
  0x28   :  { %v93_v6 = vsub.s32 1, %v88_v5  ;;  %v97_v10 = vsub.s32 2, %v88_v5  ;;  %v89_v11 = vsub.s32 0, %v88_v5  ;;  %v101_v12 = vsub.s32 3, %v88_v5  ;;  %s181_s5 = sshll.u32 %s288_s3, 4  ;;  %s182_s5 = int_to_ptr.vmem [resolvable:$true] %s181_s5 }
  0x29   :  { %63 = vrot.lane.b32.xlu1 %v56_v2, %s286_s0  ;;  %59 = vrot.lane.b32.xlu0 %v54_v3, %s286_s0  ;;  %vm67_vm0 = vcmp.lt.s32.totalorder %v66_v7, 120  ;;  %vm80_vm1 = vcmp.lt.s32.totalorder %v66_v7, 8  ;;  %s257_s6 = scalar_lea.vmem %s182_s5, 512  ;;  %p262_p2 = scmp.lt.s32.totalorder %s182_s5, %s182_s5 }
  0x2a   :  { %v94_v15 = vrot.slane %v85_v8, %v93_v6  ;;  %v120_v16 = vrot.slane %v111_v9, %v93_v6  ;;  %v98_v18 = vrot.slane %v85_v8, %v97_v10  ;;  %v90_v19 = vrot.slane %v85_v8, %v89_v11  ;;  %p258_p1 = scmp.ne.s32.totalorder %s182_s5, %s257_s6  ;;  %p263_p3 = scmp.lt.s32.totalorder %s257_s6, %s257_s6 }
  0x2b   :  { %v102_v20 = vrot.slane %v85_v8, %v101_v12  ;;  %v124_v21 = vrot.slane %v111_v9, %v97_v10  ;;  %v128_v24 = vrot.slane %v111_v9, %v101_v12  ;;  %v116_v26 = vrot.slane %v111_v9, %v89_v11 }
  0x2c   :  { %v108_v28 = vmul.f32 %v94_v15, %v54_v3  ;;  %v150_v31 = vrot.slane %v141_v17, %v93_v6  ;;  %v109_v33 = vmul.f32 %v98_v18, %v55_v0  ;;  %v107_v34 = vmul.f32 %v90_v19, %v53_v1  ;;  %p264_p4 = por %p263_p3, %p262_p2 }
  0x2d   :  { %74 = vrot.lane.b32.xlu1 %v54_v3, %s287_s29  ;;  %72 = vrot.lane.b32.xlu0 %v53_v1, %s287_s29  ;;  %v110_v35 = vmul.f32 %v102_v20, %v56_v2  ;;  %v146_v41 = vrot.slane %v141_v17, %v89_v11  ;;  %v154_v42 = vrot.slane %v141_v17, %v97_v10 }
  0x2e   :  { %v158_v46 = vrot.slane %v141_v17, %v101_v12  ;;  %p265_p5 = pnand %p264_p4, %p258_p1 }
  0x31   :  { %78 = vrot.lane.b32.xlu1 %v56_v2, %s287_s29  ;;  %76 = vrot.lane.b32.xlu0 %v55_v0, %s287_s29 }
  0x97   :  { %v62_v13 = vpop.permute.xlu1 %61  ;;  %v58_v14 = vpop.permute.xlu0 %57 }
  0x9b   :  { %v64_v22 = vpop.permute.xlu1 %63  ;;  %v60_v23 = vpop.permute.xlu0 %59 }
  0x9c   :  { %v68_v25 = vsel %vm67_vm0, %v62_v13, %v64_v22  ;;  %v69_v27 = vsel %vm67_vm0, %v60_v23, %v62_v13  ;;  %v71_v29 = vsel %vm67_vm0, %v64_v22, %v58_v14  ;;  %v70_v32 = vsel %vm67_vm0, %v58_v14, %v60_v23 }
  0x9d   :  { %v134_v30 = vmul.f32 %v120_v16, %v69_v27  ;;  %v135_v36 = vmul.f32 %v124_v21, %v68_v25  ;;  %v136_v39 = vmul.f32 %v128_v24, %v71_v29  ;;  %v133_v43 = vmul.f32 %v116_v26, %v70_v32 }
  0x9f   :  { %v75_v37 = vpop.permute.xlu1 %74  ;;  %v73_v38 = vpop.permute.xlu0 %72  ;;  %v138_v44 = vadd.f32 %v134_v30, %v108_v28  ;;  %v139_v47 = vadd.f32 %v135_v36, %v109_v33  ;;  %v140_v51 = vadd.f32 %v136_v39, %v110_v35  ;;  %v137_v55 = vadd.f32 %v133_v43, %v107_v34 }
  0xa0   :  { %v83_v40 = vsel %vm80_vm1, %v73_v38, %v75_v37 }
  0xa1   :  { %v164_v45 = vmul.f32 %v150_v31, %v83_v40 }
  0xa3   :  { %v168_v48 = vadd.f32 %v164_v45, %v138_v44  ;;  %v79_v49 = vpop.permute.xlu1 %78  ;;  %v77_v50 = vpop.permute.xlu0 %76 }
  0xa4   :  { %v84_v52 = vsel %vm80_vm1, %v79_v49, %v73_v38  ;;  %v81_v53 = vsel %vm80_vm1, %v77_v50, %v79_v49  ;;  %v82_v54 = vsel %vm80_vm1, %v75_v37, %v77_v50 }
  0xa5   :  { %172 = vst [vmem:[#allocation8 + $0x8] sm:$0xff] %v168_v48  ;;  %v163_v56 = vmul.f32 %v146_v41, %v84_v52  ;;  %v165_v57 = vmul.f32 %v154_v42, %v82_v54  ;;  %v166_v58 = vmul.f32 %v158_v46, %v81_v53 }
  0xa7   :  { %v167_v59 = vadd.f32 %v163_v56, %v137_v55  ;;  %v169_v60 = vadd.f32 %v165_v57, %v139_v47  ;;  %v170_v61 = vadd.f32 %v166_v58, %v140_v51 }
  0xa9   :  { %171 = vst [vmem:[#allocation8] sm:$0xff] %v167_v59  ;;  %173 = vst [vmem:[#allocation8 + $0x10] sm:$0xff] %v169_v60 }
  0xaa   :  { %174 = vst [vmem:[#allocation8 + $0x18] sm:$0xff] %v170_v61 }
  0xab   :  { %268 = shalt.err (!%p265_p5)
}
  0xac   :  { %184 = dma.vmem_to_hbm [thread:$0]  %s182_s5, 512, %s341_s4, [#allocation4]  }
  0xad   :  { %281 = dma.done.wait [#allocation4], 512  }
  0xae   :  { %282 = vsyncadd [#allocation4], 4294966784 }
  0xaf   :  { %188 = vsyncpa [#allocation3], 1 }
  0xb0   :  { %189 = vsyncpa [#allocation6], 1 }
  0xb1   :  { %190 = vsyncpa [#allocation4], 1 }

</bundles_post_ra>
